<compile_context>
chip_gen: v7x
topology: tpu7x:2x2x1
jax: 0.10.0
libtpu: 0.0.40
codegen_flags: <defaults>
</compile_context>

<pallas_src>
import jax
import jax.numpy as jnp
from jax.experimental import pallas as pl
from jax.experimental.pallas import tpu as pltpu

EPS = 1e-5  # F.layer_norm default


def _layer_norm(x):
    """F.layer_norm(x, x.shape[1:]) with no affine params, eps=1e-5.

    Two-pass (centered) variance for numerical fidelity to PyTorch."""
    inv_n = 1.0 / x.shape[-1]
    mean = jnp.sum(x, axis=-1, keepdims=True) * inv_n
    xc = x - mean
    var = jnp.sum(xc * xc, axis=-1, keepdims=True) * inv_n
    return xc * jax.lax.rsqrt(var + EPS)


def critic_kernel(s_ref, w1_ref, b1_ref, w2_ref, b2_ref, w3_ref, b3_ref,
                  out_ref):
    s = s_ref[...].astype(jnp.float32)

    # trick['feature_norm']
    s = _layer_norm(s)

    # MXU compute dtype follows the weights (bf16 by default, f32 optional);
    # accumulation is always f32 via preferred_element_type.
    cdt = w1_ref.dtype

    # q = relu(l1(s)) ; LayerNorm   (bias add + relu + LN stay in f32)
    q = jnp.dot(s.astype(cdt), w1_ref[...], preferred_element_type=jnp.float32)
    q = jnp.maximum(q + b1_ref[...], 0.0)
    q = _layer_norm(q)

    # q = relu(l2(q)) ; LayerNorm
    q = jnp.dot(q.astype(cdt), w2_ref[...], preferred_element_type=jnp.float32)
    q = jnp.maximum(q + b2_ref[...], 0.0)
    q = _layer_norm(q)

    # Final layer as (1, H2) contracted against (tile_b, H2) on the H axis:
    # result is (1, tile_b) -> per-row values along lanes, so the store below
    # is a dense lane write instead of a masked (tile_b, 1) store.
    v = jax.lax.dot_general(
        w3_ref[...].astype(jnp.float32), q,
        dimension_numbers=(((1,), (1,)), ((), ())),
        preferred_element_type=jnp.float32)
    out_ref[...] = (v + b3_ref[...]).astype(out_ref.dtype)


def _round_up(x, m):
    return ((x + m - 1) // m) * m


def _tpu_generation():
    """Rough chip-generation probe (5 = v5-class, 6 = v6e, 7 = v7x)."""
    try:
        kind = jax.devices()[0].device_kind.lower()
    except Exception:
        return 6
    if "v5" in kind:
        return 5
    if "v6" in kind:
        return 6
    if "v7" in kind or "7x" in kind:
        return 7
    return 6


def _choose_tiling(B, gen):
    """Returns (tile_b, padded_B).

    Large tiles amortize the ~0.35us/grid-step overhead; v7x additionally
    needs >= 2 grid steps so both TensorCores get work."""
    cap = 2048 if gen < 6 else 4096        # per-generation VMEM headroom
    min_steps = 2 if gen >= 7 else 1       # v7x: shard across 2 TCs
    small_cut = 256 if min_steps == 2 else 512
    if B <= small_cut:
        return B, B                        # one full block, no padding
    steps = max(min_steps, -(-B // cap))
    tile_b = min(cap, _round_up(-(-B // steps), 128))  # 128-aligned lanes
    while steps * tile_b < B:              # safety; shouldn't trigger
        steps += 1
    return tile_b, steps * tile_b


def _vmem_limit_bytes(tile_b, D, H1, H2, gen):
    """Scoped-VMEM request sized from the actual working set (never the whole
    physical VMEM of the chip)."""
    f32 = 4
    weights = (D * H1 + H1 + H1 * H2 + 2 * H2 + 1) * f32
    blocks = 2 * (tile_b * D * f32 + tile_b * f32 + weights)  # 2x-buffered I/O
    slabs = 8 * tile_b * max(D, H1, H2) * f32                 # live f32 temps (generous)
    need = blocks + slabs
    if need <= (8 << 20):
        return None                        # default scoped limit is plenty
    cap = (48 << 20) if gen >= 7 else (64 << 20)
    return min(max(2 * need, 32 << 20), cap)


def critic_forward(s, params, *, tile_b=None, use_bf16=None):
    """s: (B, D) float32 -> (B, 1) float32."""
    w1, b1, w2, b2, w3, b3 = params
    B, D = s.shape
    H1 = w1.shape[1]
    H2 = w2.shape[1]
    gen = _tpu_generation()

    if use_bf16 is None:
        use_bf16 = True                    # MXUs are bf16-native on v5e/v6e/v7x
    if tile_b is None:
        tile_b, b_pad = _choose_tiling(B, gen)
    else:
        b_pad = _round_up(B, tile_b)

    if b_pad != B:
        # Wrapper-side padding: layout plumbing only; zero rows stay finite
        # through LayerNorm (eps > 0) and are sliced off below.
        s = jnp.pad(s, ((0, b_pad - B), (0, 0)))

    if use_bf16:
        # bf16 feeds the MXU; accumulation stays f32 in-kernel.
        w1 = w1.astype(jnp.bfloat16)
        w2 = w2.astype(jnp.bfloat16)

    grid = (b_pad // tile_b,)
    full = lambda i: (0, 0)   # weights / biases: same full block every step

    out = pl.pallas_call(
        critic_kernel,
        out_shape=jax.ShapeDtypeStruct((1, b_pad), jnp.float32),
        grid=grid,
        in_specs=[
            pl.BlockSpec((tile_b, D), lambda i: (i, 0)),   # s
            pl.BlockSpec((D, H1), full),                   # W1 (in, out)
            pl.BlockSpec((1, H1), full),                   # b1
            pl.BlockSpec((H1, H2), full),                  # W2 (in, out)
            pl.BlockSpec((1, H2), full),                   # b2
            pl.BlockSpec((1, H2), full),                   # W3 (out=1, in)
            pl.BlockSpec((1, 1), full),                    # b3
        ],
        out_specs=pl.BlockSpec((1, tile_b), lambda i: (0, i)),
        compiler_params=pltpu.CompilerParams(
            dimension_semantics=("parallel",),
            vmem_limit_bytes=_vmem_limit_bytes(tile_b, D, H1, H2, gen)),
    )(s, w1, b1, w2, b2, w3, b3)

    return out.T[:B]  # (B, 1)


def orthogonal_init(key, out_dim, in_dim, gain):
    """Deterministic orthogonal init matching nn.init.orthogonal_ semantics.
    Returns weight in PyTorch layout (out, in)."""
    rows, cols = out_dim, in_dim
    flat = jax.random.normal(key, (max(rows, cols), min(rows, cols)),
                             dtype=jnp.float32)
    q, r = jnp.linalg.qr(flat)
    q = q * jnp.sign(jnp.diagonal(r))  # make decomposition unique
    if rows < cols:
        q = q.T
    return gain * q[:rows, :cols]      # (out, in)


def make_params(key, global_obs_dim, hidden_1=128, hidden_2=128):
    gain = jnp.sqrt(2.0)  # nn.init.calculate_gain('relu')
    k1, k2, k3 = jax.random.split(key, 3)
    w1 = orthogonal_init(k1, hidden_1, global_obs_dim, gain).T  # (D,  H1)
    w2 = orthogonal_init(k2, hidden_2, hidden_1, gain).T        # (H1, H2)
    w3 = orthogonal_init(k3, 1, hidden_2, gain)                 # (1,  H2)
    b1 = jnp.zeros((1, hidden_1), jnp.float32)
    b2 = jnp.zeros((1, hidden_2), jnp.float32)
    b3 = jnp.zeros((1, 1), jnp.float32)
    return (w1, b1, w2, b2, w3, b3)


def critic_ref(s, params):
    """Pure-JAX reference mirroring the PyTorch forward."""
    w1, b1, w2, b2, w3, b3 = params
    s = _layer_norm(s)
    q = jax.nn.relu(s @ w1 + b1)
    q = _layer_norm(q)
    q = jax.nn.relu(q @ w2 + b2)
    q = _layer_norm(q)
    return q @ w3.T + b3


if __name__ == "__main__":
    # dim_info like {"agent_0": [12, ...], "agent_1": [12, ...], "agent_2": [8, ...]}
    dim_info = {"agent_0": [12], "agent_1": [12], "agent_2": [8]}
    global_obs_dim = sum(v[0] for v in dim_info.values())  # 32
    hidden_1 = hidden_2 = 128

    key = jax.random.PRNGKey(0)
    k_param, k1, k2, k3 = jax.random.split(key, 4)
    params = make_params(k_param, global_obs_dim, hidden_1, hidden_2)

    # 1) tiny rollout batch: single grid step, full block, f32 MXU path.
    s_small = jax.random.normal(k1, (8, global_obs_dim), dtype=jnp.float32)
    out = jax.block_until_ready(critic_forward(s_small, params, use_bf16=False))
    ref = jax.block_until_ready(critic_ref(s_small, params))
    assert out.shape == (8, 1), out.shape
    assert jnp.allclose(out, ref, atol=1e-4, rtol=1e-4), (
        f"max abs err {jnp.max(jnp.abs(out - ref))}")

    # 2) ragged batch with explicit tile: exercises wrapper-side padding
    #    (300 -> 384) and a multi-step parallel grid with dense lane stores.
    s_mid = jax.random.normal(k2, (300, global_obs_dim), dtype=jnp.float32)
    out_m = jax.block_until_ready(
        critic_forward(s_mid, params, tile_b=128, use_bf16=False))
    ref_m = jax.block_until_ready(critic_ref(s_mid, params))
    assert out_m.shape == (300, 1), out_m.shape
    assert jnp.allclose(out_m, ref_m, atol=1e-4, rtol=1e-4), (
        f"max abs err {jnp.max(jnp.abs(out_m - ref_m))}")

    # 3) training-sized batch on the default path (auto tile, bf16 weights on
    #    the MXU, f32 accumulation) -> looser tolerance for bf16 quantization.
    s_big = jax.random.normal(k3, (1024, global_obs_dim), dtype=jnp.float32)
    out_b = jax.block_until_ready(critic_forward(s_big, params))
    ref_b = jax.block_until_ready(critic_ref(s_big, params))
    assert out_b.shape == (1024, 1), out_b.shape
    assert jnp.allclose(out_b, ref_b, atol=1e-1, rtol=1e-1), (
        f"max abs err {jnp.max(jnp.abs(out_b - ref_b))}")

    print("KERNEL_OK")
</pallas_src>

<mosaic_0001>
module attributes {stable_mosaic.version = 11 : i64} {
  func.func @critic_kernel(%arg0: i32, %arg1: memref<8x32xf32, #tpu.memory_space<vmem>>, %arg2: memref<32x128xf32, #tpu.memory_space<vmem>>, %arg3: memref<1x128xf32, #tpu.memory_space<vmem>>, %arg4: memref<128x128xf32, #tpu.memory_space<vmem>>, %arg5: memref<1x128xf32, #tpu.memory_space<vmem>>, %arg6: memref<1x128xf32, #tpu.memory_space<vmem>>, %arg7: memref<1x1xf32, #tpu.memory_space<vmem>>, %arg8: memref<1x8xf32, #tpu.memory_space<vmem>>) attributes {dimension_semantics = [#tpu.dimension_semantics<parallel>], iteration_bounds = array<i64: 1>, scalar_prefetch = 0 : i64, scratch_operands = 0 : i64, tpu.core_type = #tpu.core_type<tc>, window_params = [{transform_indices = @transform_0, window_bounds = array<i64: 8, 32>}, {pipeline_mode = #tpu.pipeline_mode<synchronous>, transform_indices = @transform_1, window_bounds = array<i64: 32, 128>}, {pipeline_mode = #tpu.pipeline_mode<synchronous>, transform_indices = @transform_2, window_bounds = array<i64: 1, 128>}, {pipeline_mode = #tpu.pipeline_mode<synchronous>, transform_indices = @transform_3, window_bounds = array<i64: 128, 128>}, {pipeline_mode = #tpu.pipeline_mode<synchronous>, transform_indices = @transform_4, window_bounds = array<i64: 1, 128>}, {pipeline_mode = #tpu.pipeline_mode<synchronous>, transform_indices = @transform_5, window_bounds = array<i64: 1, 128>}, {pipeline_mode = #tpu.pipeline_mode<synchronous>, transform_indices = @transform_6, window_bounds = array<i64: 1, 1>}, {transform_indices = @transform_7, window_bounds = array<i64: 1, 8>}]} {
    %c0 = arith.constant 0 : index
    %c0_0 = arith.constant 0 : index
    %0 = vector.load %arg1[%c0, %c0_0] : memref<8x32xf32, #tpu.memory_space<vmem>>, vector<8x32xf32>
    %cst = arith.constant dense<0.000000e+00> : vector<8xf32>
    %1 = vector.multi_reduction <add>, %0, %cst [1] : vector<8x32xf32> to vector<8xf32>
    %2 = vector.shape_cast %1 : vector<8xf32> to vector<8x1xf32>
    %cst_1 = arith.constant 3.125000e-02 : f32
    %3 = vector.broadcast %cst_1 : f32 to vector<8x1xf32>
    %4 = arith.mulf %2, %3 : vector<8x1xf32>
    %5 = vector.broadcast %4 : vector<8x1xf32> to vector<8x32xf32>
    %6 = arith.subf %0, %5 : vector<8x32xf32>
    %7 = arith.mulf %6, %6 : vector<8x32xf32>
    %cst_2 = arith.constant dense<0.000000e+00> : vector<8xf32>
    %8 = vector.multi_reduction <add>, %7, %cst_2 [1] : vector<8x32xf32> to vector<8xf32>
    %9 = vector.shape_cast %8 : vector<8xf32> to vector<8x1xf32>
    %cst_3 = arith.constant 3.125000e-02 : f32
    %10 = vector.broadcast %cst_3 : f32 to vector<8x1xf32>
    %11 = arith.mulf %9, %10 : vector<8x1xf32>
    %cst_4 = arith.constant 9.99999974E-6 : f32
    %12 = vector.broadcast %cst_4 : f32 to vector<8x1xf32>
    %13 = arith.addf %11, %12 : vector<8x1xf32>
    %14 = math.rsqrt %13 : vector<8x1xf32>
    %15 = vector.broadcast %14 : vector<8x1xf32> to vector<8x32xf32>
    %16 = arith.mulf %6, %15 : vector<8x32xf32>
    %c0_5 = arith.constant 0 : index
    %c0_6 = arith.constant 0 : index
    %17 = vector.load %arg2[%c0_5, %c0_6] : memref<32x128xf32, #tpu.memory_space<vmem>>, vector<32x128xf32>
    %cst_7 = arith.constant dense<0.000000e+00> : vector<8x128xf32>
    %18 = tpu.matmul %16, %17, %cst_7 {dimension_numbers = #tpu.dot_dimension_numbers<[1], [0], [0], [1], [0, 0, 1, 1], [], []>} : vector<8x32xf32>, vector<32x128xf32>, vector<8x128xf32> -> vector<8x128xf32>
    %c0_8 = arith.constant 0 : index
    %c0_9 = arith.constant 0 : index
    %19 = vector.load %arg3[%c0_8, %c0_9] : memref<1x128xf32, #tpu.memory_space<vmem>>, vector<1x128xf32>
    %20 = vector.broadcast %19 : vector<1x128xf32> to vector<8x128xf32>
    %21 = arith.addf %18, %20 : vector<8x128xf32>
    %cst_10 = arith.constant 0.000000e+00 : f32
    %22 = vector.broadcast %cst_10 : f32 to vector<8x128xf32>
    %23 = arith.maximumf %21, %22 : vector<8x128xf32>
    %cst_11 = arith.constant dense<0.000000e+00> : vector<8xf32>
    %24 = vector.multi_reduction <add>, %23, %cst_11 [1] : vector<8x128xf32> to vector<8xf32>
    %25 = vector.shape_cast %24 : vector<8xf32> to vector<8x1xf32>
    %cst_12 = arith.constant 7.812500e-03 : f32
    %26 = vector.broadcast %cst_12 : f32 to vector<8x1xf32>
    %27 = arith.mulf %25, %26 : vector<8x1xf32>
    %28 = vector.broadcast %27 : vector<8x1xf32> to vector<8x128xf32>
    %29 = arith.subf %23, %28 : vector<8x128xf32>
    %30 = arith.mulf %29, %29 : vector<8x128xf32>
    %cst_13 = arith.constant dense<0.000000e+00> : vector<8xf32>
    %31 = vector.multi_reduction <add>, %30, %cst_13 [1] : vector<8x128xf32> to vector<8xf32>
    %32 = vector.shape_cast %31 : vector<8xf32> to vector<8x1xf32>
    %cst_14 = arith.constant 7.812500e-03 : f32
    %33 = vector.broadcast %cst_14 : f32 to vector<8x1xf32>
    %34 = arith.mulf %32, %33 : vector<8x1xf32>
    %cst_15 = arith.constant 9.99999974E-6 : f32
    %35 = vector.broadcast %cst_15 : f32 to vector<8x1xf32>
    %36 = arith.addf %34, %35 : vector<8x1xf32>
    %37 = math.rsqrt %36 : vector<8x1xf32>
    %38 = vector.broadcast %37 : vector<8x1xf32> to vector<8x128xf32>
    %39 = arith.mulf %29, %38 : vector<8x128xf32>
    %c0_16 = arith.constant 0 : index
    %c0_17 = arith.constant 0 : index
    %40 = vector.load %arg4[%c0_16, %c0_17] : memref<128x128xf32, #tpu.memory_space<vmem>>, vector<128x128xf32>
    %cst_18 = arith.constant dense<0.000000e+00> : vector<8x128xf32>
    %41 = tpu.matmul %39, %40, %cst_18 {dimension_numbers = #tpu.dot_dimension_numbers<[1], [0], [0], [1], [0, 0, 1, 1], [], []>} : vector<8x128xf32>, vector<128x128xf32>, vector<8x128xf32> -> vector<8x128xf32>
    %c0_19 = arith.constant 0 : index
    %c0_20 = arith.constant 0 : index
    %42 = vector.load %arg5[%c0_19, %c0_20] : memref<1x128xf32, #tpu.memory_space<vmem>>, vector<1x128xf32>
    %43 = vector.broadcast %42 : vector<1x128xf32> to vector<8x128xf32>
    %44 = arith.addf %41, %43 : vector<8x128xf32>
    %cst_21 = arith.constant 0.000000e+00 : f32
    %45 = vector.broadcast %cst_21 : f32 to vector<8x128xf32>
    %46 = arith.maximumf %44, %45 : vector<8x128xf32>
    %cst_22 = arith.constant dense<0.000000e+00> : vector<8xf32>
    %47 = vector.multi_reduction <add>, %46, %cst_22 [1] : vector<8x128xf32> to vector<8xf32>
    %48 = vector.shape_cast %47 : vector<8xf32> to vector<8x1xf32>
    %cst_23 = arith.constant 7.812500e-03 : f32
    %49 = vector.broadcast %cst_23 : f32 to vector<8x1xf32>
    %50 = arith.mulf %48, %49 : vector<8x1xf32>
    %51 = vector.broadcast %50 : vector<8x1xf32> to vector<8x128xf32>
    %52 = arith.subf %46, %51 : vector<8x128xf32>
    %53 = arith.mulf %52, %52 : vector<8x128xf32>
    %cst_24 = arith.constant dense<0.000000e+00> : vector<8xf32>
    %54 = vector.multi_reduction <add>, %53, %cst_24 [1] : vector<8x128xf32> to vector<8xf32>
    %55 = vector.shape_cast %54 : vector<8xf32> to vector<8x1xf32>
    %cst_25 = arith.constant 7.812500e-03 : f32
    %56 = vector.broadcast %cst_25 : f32 to vector<8x1xf32>
    %57 = arith.mulf %55, %56 : vector<8x1xf32>
    %cst_26 = arith.constant 9.99999974E-6 : f32
    %58 = vector.broadcast %cst_26 : f32 to vector<8x1xf32>
    %59 = arith.addf %57, %58 : vector<8x1xf32>
    %60 = math.rsqrt %59 : vector<8x1xf32>
    %61 = vector.broadcast %60 : vector<8x1xf32> to vector<8x128xf32>
    %62 = arith.mulf %52, %61 : vector<8x128xf32>
    %c0_27 = arith.constant 0 : index
    %c0_28 = arith.constant 0 : index
    %63 = vector.load %arg6[%c0_27, %c0_28] : memref<1x128xf32, #tpu.memory_space<vmem>>, vector<1x128xf32>
    %cst_29 = arith.constant dense<0.000000e+00> : vector<1x8xf32>
    %64 = tpu.matmul %63, %62, %cst_29 {dimension_numbers = #tpu.dot_dimension_numbers<[1], [1], [0], [0], [0, 0, 1, 0], [], []>} : vector<1x128xf32>, vector<8x128xf32>, vector<1x8xf32> -> vector<1x8xf32>
    %c0_30 = arith.constant 0 : index
    %c0_31 = arith.constant 0 : index
    %65 = vector.load %arg7[%c0_30, %c0_31] : memref<1x1xf32, #tpu.memory_space<vmem>>, vector<1x1xf32>
    %66 = vector.broadcast %65 : vector<1x1xf32> to vector<1x8xf32>
    %67 = arith.addf %64, %66 : vector<1x8xf32>
    %c0_32 = arith.constant 0 : index
    %c0_33 = arith.constant 0 : index
    %68 = vector.load %arg8[%c0_32, %c0_33] : memref<1x8xf32, #tpu.memory_space<vmem>>, vector<1x8xf32>
    tpu.vector_store %arg8[%c0_32, %c0_33], %67 {strides = array<i32>} : memref<1x8xf32, #tpu.memory_space<vmem>>, vector<1x8xf32>,
    return
  }
  func.func @transform_0(%arg0: i32) -> (i32, i32) {
    %c0_i32 = arith.constant 0 : i32
    %c0_i32_0 = arith.constant 0 : i32
    return %arg0, %c0_i32 : i32, i32
  }
  func.func @transform_1(%arg0: i32) -> (i32, i32) {
    %c0_i32 = arith.constant 0 : i32
    %c0_i32_0 = arith.constant 0 : i32
    %c0_i32_1 = arith.constant 0 : i32
    return %c0_i32, %c0_i32_0 : i32, i32
  }
  func.func @transform_2(%arg0: i32) -> (i32, i32) {
    %c0_i32 = arith.constant 0 : i32
    %c0_i32_0 = arith.constant 0 : i32
    %c0_i32_1 = arith.constant 0 : i32
    return %c0_i32, %c0_i32_0 : i32, i32
  }
  func.func @transform_3(%arg0: i32) -> (i32, i32) {
    %c0_i32 = arith.constant 0 : i32
    %c0_i32_0 = arith.constant 0 : i32
    %c0_i32_1 = arith.constant 0 : i32
    return %c0_i32, %c0_i32_0 : i32, i32
  }
  func.func @transform_4(%arg0: i32) -> (i32, i32) {
    %c0_i32 = arith.constant 0 : i32
    %c0_i32_0 = arith.constant 0 : i32
    %c0_i32_1 = arith.constant 0 : i32
    return %c0_i32, %c0_i32_0 : i32, i32
  }
  func.func @transform_5(%arg0: i32) -> (i32, i32) {
    %c0_i32 = arith.constant 0 : i32
    %c0_i32_0 = arith.constant 0 : i32
    %c0_i32_1 = arith.constant 0 : i32
    return %c0_i32, %c0_i32_0 : i32, i32
  }
  func.func @transform_6(%arg0: i32) -> (i32, i32) {
    %c0_i32 = arith.constant 0 : i32
    %c0_i32_0 = arith.constant 0 : i32
    %c0_i32_1 = arith.constant 0 : i32
    return %c0_i32, %c0_i32_0 : i32, i32
  }
  func.func @transform_7(%arg0: i32) -> (i32, i32) {
    %c0_i32 = arith.constant 0 : i32
    %c0_i32_0 = arith.constant 0 : i32
    return %c0_i32, %arg0 : i32, i32
  }
}

</mosaic_0001>

<bundles_post_ra>
// kernel: tpu_custom_call.1
= control target key start
LH: loop header
LB: loop body
LE: loop exit
PB: predicated region body
PF: predicated region fallthrough
CT: control target
= control target key end

     0   :  { %s734_s0 = inlined_call_operand.hbm [shape: f32[8,32], index: 0, kind: input, shape index: {}]   ;;  %s735_s1 = inlined_call_operand.hbm [shape: f32[32,128], index: 1, kind: input, shape index: {}]   ;;  %s736_s2 = inlined_call_operand.vmem [shape: f32[1,128], index: 2, kind: input, shape index: {}]   ;;  %s737_s3 = inlined_call_operand.hbm [shape: f32[128,128], index: 3, kind: input, shape index: {}]   ;;  %s738_s4 = inlined_call_operand.vmem [shape: f32[1,128], index: 4, kind: input, shape index: {}]   ;;  %s739_s5 = inlined_call_operand.vmem [shape: f32[1,128], index: 5, kind: input, shape index: {}]   ;;  %s740_s6 = inlined_call_operand.<no memory space> [shape: f32[1,1], index: 6, kind: input, shape index: {}]   ;;  %s741_s7 = inlined_call_operand.hbm [shape: f32[1,8], index: 7, kind: output, shape index: {}]  }
   0x1   :  { %v12_v0 = vstv %s740_s6 }
   0x2   :  { %13 = vst [vmem:[#allocation2] sm:$0x1] %v12_v0 }
   0x3   :  { %14 = vsyncpa [#allocation4], 0 }
   0x4   :  { %15 = vsyncpa [#allocation7], 0 }
   0x5   :  { %16 = vsyncpa [#allocation5], 0  ;;  %s602_s26 = smov [#allocation6]   ;;  %s508_s30 = scalar_lea.hbm %s735_s1, 512 }
   0x6   :  { %s32_s27 = sshll.u32 %s602_s26, 4  ;;  %p509_p0 = scmp.ne.s32.totalorder %s735_s1, %s508_s30  ;;  %s33_s27 = int_to_ptr.vmem [resolvable:$true] %s32_s27 }
   0x7   :  { %p512_p1 = scmp.lt.u32.totalorder %s508_s30, %s735_s1 }
   0x9   :  { %p514_p2 = pnand %p512_p1, %p509_p0 }
   0xb   :  { %517 = shalt.err (!%p514_p2)
}
   0xc   :  { %s518_s6 = scalar_lea.vmem %s33_s27, 512  ;;  %p523_p4 = scmp.lt.s32.totalorder %s33_s27, %s33_s27 }
   0xd   :  { %p519_p3 = scmp.ne.s32.totalorder %s33_s27, %s518_s6  ;;  %p524_p5 = scmp.lt.s32.totalorder %s518_s6, %s518_s6 }
   0xf   :  { %p525_p6 = por %p524_p5, %p523_p4 }
  0x11   :  { %p526_p7 = pnand %p525_p6, %p519_p3 }
  0x13   :  { %529 = shalt.err (!%p526_p7)
}
  0x14   :  { %s603_s12 = smov 128   ;;  %s604_s13 = smov 8  }
  0x15   :  { %38 = dma.hbm_to_vmem [thread:$0]  %s735_s1, 512, %s33_s27, [#allocation7], %s603_s12, %s603_s12, %s604_s13  }
  0x16   :  { %s605_s16 = smov [#allocation3]   ;;  %s606_s18 = smov [#allocation8]  }
  0x17   :  { %s23_s17 = sshll.u32 %s605_s16, 4  ;;  %s46_s19 = sshll.u32 %s606_s18, 4  ;;  %s24_s17 = int_to_ptr.vmem [resolvable:$true] %s23_s17  ;;  %s47_s19 = int_to_ptr.vmem [resolvable:$true] %s46_s19 }
  0x18   :  { %s530_s22 = scalar_lea.hbm %s734_s0, 128 }
  0x19   :  { %p531_p8 = scmp.ne.s32.totalorder %s734_s0, %s530_s22  ;;  %p534_p9 = scmp.lt.u32.totalorder %s530_s22, %s734_s0 }
  0x1b   :  { %p536_p10 = pnand %p534_p9, %p531_p8 }
  0x1d   :  { %539 = shalt.err (!%p536_p10)
}
  0x1e   :  { %s540_s1 = scalar_lea.vmem %s24_s17, 128  ;;  %p545_p12 = scmp.lt.s32.totalorder %s24_s17, %s24_s17 }
  0x1f   :  { %p541_p11 = scmp.ne.s32.totalorder %s24_s17, %s540_s1  ;;  %p546_p13 = scmp.lt.s32.totalorder %s540_s1, %s540_s1 }
  0x21   :  { %p547_p0 = por %p546_p13, %p545_p12 }
  0x23   :  { %p548_p1 = pnand %p547_p0, %p541_p11 }
  0x25   :  { %551 = shalt.err (!%p548_p1)
}
  0x26   :  { %26 = dma.hbm_to_vmem [thread:$0]  %s734_s0, 128, %s24_s17, [#allocation4]  }
  0x27   :  { %s552_s8 = scalar_lea.hbm %s737_s3, 2048 }
  0x28   :  { %p553_p2 = scmp.ne.s32.totalorder %s737_s3, %s552_s8  ;;  %p556_p3 = scmp.lt.u32.totalorder %s552_s8, %s737_s3 }
  0x2a   :  { %p558_p4 = pnand %p556_p3, %p553_p2 }
  0x2c   :  { %561 = shalt.err (!%p558_p4)
}
  0x2d   :  { %s562_s14 = scalar_lea.vmem %s47_s19, 2048  ;;  %p567_p6 = scmp.lt.s32.totalorder %s47_s19, %s47_s19 }
  0x2e   :  { %p563_p5 = scmp.ne.s32.totalorder %s47_s19, %s562_s14  ;;  %p568_p7 = scmp.lt.s32.totalorder %s562_s14, %s562_s14 }
  0x30   :  { %p569_p8 = por %p568_p7, %p567_p6 }
  0x32   :  { %p570_p9 = pnand %p569_p8, %p563_p5 }
  0x34   :  { %573 = shalt.err (!%p570_p9)
}
  0x35   :  { %52 = dma.hbm_to_vmem [thread:$0]  %s737_s3, 2048, %s47_s19, [#allocation7], %s603_s12, %s603_s12, %s604_s13  }
  0x36   :  { %596 = dma.done.wait [#allocation4], 128  }
  0x37   :  { %597 = vsyncadd [#allocation4], 4294967168 }
  0x38   :  { %598 = dma.done.wait [#allocation7], 2560  }
  0x39   :  { %599 = vsyncadd [#allocation7], 4294964736  ;;  %vm69_vm0 = vcmask 261120   ;;  %v68_v1 = vld [vmem:[#allocation3] sm:$0xff]  ;;  %v83_v8 = vld [vmem:[#allocation6] sm:$0xff]  ;;  %v607_v11 = vmov 0.0|0.0  }
  0x3a   :  { %v70_v2 = vsel %vm69_vm0, %v68_v1, 0.0  ;;  %v84_v9 = vld [vmem:[#allocation6 + $0x8] sm:$0xff]  ;;  %v85_v10 = vld [vmem:[#allocation6 + $0x10] sm:$0xff]  ;;  %461 = vmatprep.subr.bf16.mxu0 %v607_v11  ;;  %v86_v13 = vld [vmem:[#allocation6 + $0x18] sm:$0xff]  ;;  %vm608_vm1 = vmmov 0   ;;  %v609_v14 = vmov 0.0   ;;  %467 = vmatprep.subr.bf16.mxu1 %v607_v11 }
  0x3b   :  { %71 = vadd.xlane.f32.xlu0 %v70_v2  ;;  %v462_v12 = vpack.c.bf16 %v84_v9, %v83_v8  ;;  %418 = vmatprep.mubr.msk.f32.mxu0 %vm608_vm1, %v609_v14  ;;  %v465_v15 = vpack.c.bf16 %v86_v13, %v85_v10  ;;  %v383_v21 = vld [vmem:[%s736_s2] ss:$0 sm:$0xff]  ;;  %v179_v26 = vld [vmem:[#allocation8] sm:$0xff]  ;;  %v180_v27 = vld [vmem:[#allocation8 + $0x8] sm:$0xff]  ;;  %s611_s17 = smov [#allocation9]   ;;  %vm365_vm2 = vcmask 57344  }
  0x3c   :  { %453 = vmatprep.mubr.msk.f32.mxu1 %vm608_vm1, %v609_v14  ;;  %v181_v28 = vld [vmem:[#allocation8 + $0x10] sm:$0xff]  ;;  %v468_v29 = vpack.c.bf16 %v180_v27, %v179_v26  ;;  %v182_v30 = vld [vmem:[#allocation8 + $0x18] sm:$0xff]  ;;  %v183_v32 = vld [vmem:[#allocation8 + $0x20] sm:$0xff]  ;;  %s373_s18 = sshll.u32 %s611_s17, 4  ;;  %s374_s18 = int_to_ptr.vmem [resolvable:$true] %s373_s18 }
  0x3d   :  { %463 = vmatpush3.bf16.msra.mxu0 %v462_v12  ;;  %v471_v31 = vpack.c.bf16 %v182_v30, %v181_v28  ;;  %v184_v33 = vld [vmem:[#allocation8 + $0x28] sm:$0xff]  ;;  %v185_v35 = vld [vmem:[#allocation8 + $0x30] sm:$0xff]  ;;  %v186_v36 = vld [vmem:[#allocation8 + $0x38] sm:$0xff]  ;;  %v291_v12 = vlaneseq  ;;  %s574_s19 = scalar_lea.vmem %s374_s18, 16  ;;  %s578_s20 = scalar_lea.vmem %s374_s18, 32 }
  0x3e   :  { %464 = vmatprep.subr.bf16.mxu0 %v607_v11  ;;  %469 = vmatpush3.bf16.msra.mxu1 %v468_v29  ;;  %v474_v34 = vpack.c.bf16 %v184_v33, %v183_v32  ;;  %v477_v37 = vpack.c.bf16 %v186_v36, %v185_v35  ;;  %v187_v42 = vld [vmem:[#allocation8 + $0x40] sm:$0xff]  ;;  %v188_v43 = vld [vmem:[#allocation8 + $0x48] sm:$0xff]  ;;  %v189_v45 = vld [vmem:[#allocation8 + $0x50] sm:$0xff]  ;;  %p575_p10 = scmp.ne.s32.totalorder %s374_s18, %s574_s19  ;;  %p579_p11 = scmp.lt.s32.totalorder %s374_s18, %s374_s18 }
  0x3f   :  { %470 = vmatprep.subr.bf16.mxu1 %v607_v11  ;;  %v480_v44 = vpack.c.bf16 %v188_v43, %v187_v42  ;;  %v190_v46 = vld [vmem:[#allocation8 + $0x58] sm:$0xff]  ;;  %v191_v48 = vld [vmem:[#allocation8 + $0x60] sm:$0xff]  ;;  %v192_v49 = vld [vmem:[#allocation8 + $0x68] sm:$0xff]  ;;  %v292_v13 = vshrl.u32 %v291_v12, 7  ;;  %p580_p12 = scmp.lt.s32.totalorder %s578_s20, %s574_s19 }
  0x40   :  { %v483_v47 = vpack.c.bf16 %v190_v46, %v189_v45  ;;  %v486_v50 = vpack.c.bf16 %v192_v49, %v191_v48  ;;  %v193_v51 = vld [vmem:[#allocation8 + $0x70] sm:$0xff]  ;;  %v194_v52 = vld [vmem:[#allocation8 + $0x78] sm:$0xff] }
  0x41   :  { %466 = vmatpush3.bf16.msra.mxu0 %v465_v15  ;;  %v489_v53 = vpack.c.bf16 %v194_v52, %v193_v51  ;;  %v385_v59 = vld [vmem:[%s738_s4] ss:$0 sm:$0xff]  ;;  %p581_p13 = por %p580_p12, %p579_p11 }
  0x42   :  { %456 = vmatprep.subr.mxu0 %v609_v14  ;;  %472 = vmatpush3.bf16.msra.mxu1 %v471_v31 }
  0x43   :  { %473 = vmatprep.subr.bf16.mxu1 %v607_v11  ;;  %p582_p0 = pnand %p581_p13, %p575_p10 }
  0x46   :  { %475 = vmatpush3.bf16.msra.mxu1 %v474_v34 }
  0x47   :  { %476 = vmatprep.subr.bf16.mxu1 %v607_v11 }
  0x4a   :  { %478 = vmatpush3.bf16.msra.mxu1 %v477_v37 }
  0x4b   :  { %479 = vmatprep.subr.bf16.mxu1 %v607_v11 }
  0x4e   :  { %481 = vmatpush3.bf16.msra.mxu1 %v480_v44 }
  0x4f   :  { %482 = vmatprep.subr.bf16.mxu1 %v607_v11 }
  0x52   :  { %484 = vmatpush3.bf16.msra.mxu1 %v483_v47 }
  0x53   :  { %485 = vmatprep.subr.bf16.mxu1 %v607_v11 }
  0x56   :  { %487 = vmatpush3.bf16.msra.mxu1 %v486_v50 }
  0x57   :  { %488 = vmatprep.subr.bf16.mxu1 %v607_v11  ;;  %v284_v11 = vld [vmem:[%s739_s5] sm:$0x1] }
  0x5a   :  { %490 = vmatpush3.bf16.msra.mxu1 %v489_v53 }
  0xc8   :  { %v72_v3 = vpop.xlane.xlu0 %71 }
  0xc9   :  { %v73_v4 = vmul.f32 0.03125, %v72_v3 }
  0xcb   :  { %v74_v5 = vsub.f32 %v68_v1, %v73_v4  ;;  %v285_v4 = vld [vmem:[#allocation2] sm:$0x1] }
  0xcd   :  { %v75_v6 = vmul.f32 %v74_v5, %v74_v5 }
  0xcf   :  { %v76_v7 = vsel %vm69_vm0, %v75_v6, 0.0 }
  0xd0   :  { %77 = vadd.xlane.f32.xlu0 %v76_v7 }
 0x15d   :  { %v78_v16 = vpop.xlane.xlu0 %77 }
 0x15e   :  { %v79_v17 = vmul.f32 0.03125, %v78_v16 }
 0x160   :  { %v80_v18 = vadd.f32 1e-05, %v79_v17 }
 0x162   :  { %502 = vrsqrt.f32 %v80_v18 }
 0x16c   :  { %v503_v19 = vpop.eup %502 }
 0x16d   :  { %v82_v20 = vmul.f32 %v503_v19, %v74_v5  ;;  %v610_v5 = vmov 0  }
 0x16e   :  { %501 = vset.pattern.permute.xlu0 %v610_v5 }
 0x16f   :  { %419 = vmatmul.mubr.msk.f32.vlgmr.msra.gmra.mrb[0].mxu0 %vm69_vm0, %v82_v20 }
 0x170   :  { %458 = vmatprep.mubr.msk.f32.mxu0 %vm608_vm1, %v609_v14  ;;  %v293_v14 = vsub.s32 0, %v292_v13 }
 0x242   :  { %v163_v22 = vpop.f32.mrb[0].mxu0 }
 0x243   :  { %v164_v23 = vadd.f32 %v383_v21, %v163_v22  ;;  %v420_v24 = vpop.f32.mrb[1].mxu0 }
 0x245   :  { %v167_v25 = vmax.f32 %v164_v23, 0.0 }
 0x247   :  { %168 = vadd.xlane.f32.xlu1 %v167_v25 }
 0x2d4   :  { %v169_v38 = vpop.xlane.xlu1 %168 }
 0x2d5   :  { %v170_v39 = vmul.f32 0.0078125, %v169_v38 }
 0x2d7   :  { %v171_v40 = vsub.f32 %v167_v25, %v170_v39 }
 0x2d9   :  { %v172_v41 = vmul.f32 %v171_v40, %v171_v40 }
 0x2db   :  { %173 = vadd.xlane.f32.xlu1 %v172_v41 }
 0x368   :  { %v174_v54 = vpop.xlane.xlu1 %173 }
 0x369   :  { %v175_v55 = vmul.f32 0.0078125, %v174_v54 }
 0x36b   :  { %v176_v56 = vadd.f32 1e-05, %v175_v55 }
 0x36d   :  { %504 = vrsqrt.f32 %v176_v56 }
 0x377   :  { %v505_v57 = vpop.eup %504 }
 0x378   :  { %v178_v58 = vmul.f32 %v505_v57, %v171_v40 }
 0x37a   :  { %454 = vmatmul.mubr.f32.vlgmr.msra.gmra.mrb[0].mxu1 %v178_v58 }
 0x44d   :  { %v268_v60 = vpop.f32.mrb[0].mxu1 }
 0x44e   :  { %v269_v61 = vadd.f32 %v385_v59, %v268_v60  ;;  %v455_v62 = vpop.f32.mrb[1].mxu1 }
 0x450   :  { %v272_v63 = vmax.f32 %v269_v61, 0.0 }
 0x452   :  { %273 = vadd.xlane.f32.xlu0 %v272_v63 }
 0x468   :  { %288 = vperm.xlu0 %501, %v285_v4  }
 0x4df   :  { %v274_v0 = vpop.xlane.xlu0 %273 }
 0x4e0   :  { %v275_v1 = vmul.f32 0.0078125, %v274_v0 }
 0x4e2   :  { %v276_v2 = vsub.f32 %v272_v63, %v275_v1 }
 0x4e4   :  { %v277_v3 = vmul.f32 %v276_v2, %v276_v2 }
 0x4e6   :  { %278 = vadd.xlane.f32.xlu1 %v277_v3 }
 0x4e7   :  { %v289_v15 = vpop.permute.xlu0 %288 }
 0x4e8   :  { %v294_v16 = vrot.slane %v289_v15, %v293_v14 }
 0x573   :  { %v279_v6 = vpop.xlane.xlu1 %278 }
 0x574   :  { %v280_v7 = vmul.f32 0.0078125, %v279_v6 }
 0x576   :  { %v281_v8 = vadd.f32 1e-05, %v280_v7 }
 0x578   :  { %506 = vrsqrt.f32 %v281_v8 }
 0x582   :  { %v507_v9 = vpop.eup %506 }
 0x583   :  { %v283_v10 = vmul.f32 %v507_v9, %v276_v2 }
 0x585   :  { %457 = vmatpush3.xpose.msra.mxu0 %v283_v10 }
 0x588   :  { %459 = vmatmul.mubr.f32.vlgmr.msra.gmra.mrb[2].mxu0 %v284_v11 }
 0x65b   :  { %v361_v17 = vpop.f32.mrb[2].mxu0 }
 0x65c   :  { %v362_v18 = vadd.f32 %v361_v17, %v294_v16  ;;  %v460_v19 = vpop.f32.mrb[3].mxu0 }
 0x65e   :  { %366 = vst.msk [vmem:[#allocation9] sm:$0x1] %vm365_vm2, %v362_v18 }
 0x65f   :  { %585 = shalt.err (!%p582_p0)
}
 0x660   :  { %s586_s22 = scalar_lea.hbm %s741_s7, 16 }
 0x661   :  { %p587_p1 = scmp.ne.s32.totalorder %s741_s7, %s586_s22  ;;  %p590_p2 = scmp.lt.u32.totalorder %s586_s22, %s741_s7 }
 0x663   :  { %p592_p3 = pnand %p590_p2, %p587_p1 }
 0x665   :  { %595 = shalt.err (!%p592_p3)
}
 0x666   :  { %376 = dma.vmem_to_hbm [thread:$0]  %s374_s18, 16, %s741_s7, [#allocation5]  }
 0x667   :  { %600 = dma.done.wait [#allocation5], 16  }
 0x668   :  { %601 = vsyncadd [#allocation5], 4294967280 }
 0x669   :  { %380 = vsyncpa [#allocation4], 1 }
 0x66a   :  { %381 = vsyncpa [#allocation7], 1 }
 0x66b   :  { %382 = vsyncpa [#allocation5], 1 }

</bundles_post_ra>
